<compile_context>
chip_gen: v7x
topology: tpu7x:2x2x1
jax: 0.10.0
libtpu: 0.0.40
codegen_flags: <defaults>
</compile_context>

<pallas_src>
import functools

import jax
import jax.numpy as jnp
from jax import lax
from jax.experimental import pallas as pl
from jax.experimental.pallas import tpu as pltpu


def _focal_loss_kernel(x_ref, t_ref, out_ref, *, gamma, use_focal, n_total,
                       block_n, upcast_to_f32):
    pid = pl.program_id(0)

    x = x_ref[...]                                # (bn, C), native dtype
    if upcast_to_f32:
        x = x.astype(jnp.float32)
    t = t_ref[...]                                # (bn, 1) int32 class idx

    bn, c = x.shape

    # Row-wise stable logsumexp.  For bf16 inputs on bf16-capable chips the
    # N*C-scaled subtract/exp stays in bf16; the reduction accumulates in f32.
    m = jnp.max(x, axis=1, keepdims=True)         # (bn, 1), exact
    shifted = x - m                               # (bn, C), <= 0
    sumexp = jnp.sum(jnp.exp(shifted), axis=1, keepdims=True,
                     dtype=jnp.float32)           # (bn, 1) f32 accumulate
    lse = jnp.log(sumexp)                         # (bn, 1) f32

    # Gather the target logit with a single select (no one-hot cast + mul).
    # The picked value is exact in f32, so only lse carries bf16 exp error.
    col = lax.broadcasted_iota(jnp.int32, (bn, c), 1)
    picked_x = jnp.sum(jnp.where(col == t, x, 0), axis=1, keepdims=True,
                       dtype=jnp.float32)         # (bn, 1) f32, exact
    picked_logpt = (picked_x - m.astype(jnp.float32)) - lse   # (bn, 1) f32

    if use_focal:
        pt = jnp.exp(picked_logpt)                # (bn, 1): ~N EUP elems
        omp = 1.0 - pt
        g = float(gamma)
        if g == int(g):
            mod = lax.integer_pow(omp, int(g))    # VPU multiplies, no exp/log
        else:
            mod = omp ** g                        # fallback, 2 extra EUP/row
        picked_logpt = mod * picked_logpt

    # Mask rows beyond the true N (partial last tile / garbage padding).
    row = lax.broadcasted_iota(jnp.int32, (bn, 1), 0) + pid * block_n
    tile_sum = jnp.sum(jnp.where(row < n_total, picked_logpt, 0.0))

    # Per-tile partial sum, broadcast across one (8, 128) output block.
    out_ref[...] = jnp.broadcast_to(tile_sum, out_ref.shape)


def _bf16_vector_math_ok():
    """True on chips with a bf16 VPU/EUP path (v6e, v7x)."""
    try:
        kind = jax.devices()[0].device_kind.lower()
    except Exception:
        return False
    return ("v6" in kind) or ("v7" in kind)


def _vmem_capacity_bytes():
    try:
        return int(pltpu.get_tpu_info().vmem_capacity_bytes)
    except Exception:
        pass
    try:
        kind = jax.devices()[0].device_kind.lower()
        if "v7" in kind:
            return 64 * 1024 * 1024
        if "v5" in kind or "v6" in kind:
            return 128 * 1024 * 1024
    except Exception:
        pass
    return 64 * 1024 * 1024   # conservative default


def focal_loss(logits, target, gamma=2.0, use_focal=True, block_n=None,
               vmem_budget_bytes=None):
    """logits: [N, C] float (f32 or bf16), target: [N] int -> scalar f32 loss."""
    n, c = logits.shape
    t2d = target.astype(jnp.int32).reshape(n, 1)

    itemsize = jnp.dtype(logits.dtype).itemsize
    # Sublane packing: 8 rows for 32-bit, 16 for bf16, 32 for 8-bit dtypes.
    row_align = max(8, 32 // itemsize)

    # bf16 compute path only on bf16-capable generations; otherwise upcast.
    keep_native = (logits.dtype == jnp.bfloat16) and _bf16_vector_math_ok()
    upcast = (logits.dtype != jnp.float32) and not keep_native

    # Generation-aware VMEM budget (v7x: 64 MiB physical, v5e/v6e: 128 MiB).
    vmem_cap = _vmem_capacity_bytes()
    if vmem_budget_bytes is None:
        vmem_budget_bytes = vmem_cap // 2   # for the double-buffered inputs

    # Per-row VMEM bytes with lane padding: logits pad to a multiple of 128
    # lanes; the int32 target column pads to one full 128-lane tile (512 B).
    c_pad = ((c + 127) // 128) * 128
    bytes_per_row = c_pad * itemsize + 128 * 4

    min_bytes = 2 * 8 * bytes_per_row + 2 * 1024 * 1024
    if min_bytes > vmem_cap:
        # TODO(synk): add a C-tiled online-logsumexp grid axis for very wide C.
        raise ValueError(
            f"C={c} too wide for a whole-row tile in VMEM "
            f"({min_bytes} B needed, {vmem_cap} B available)")

    if block_n is None:
        rows = vmem_budget_bytes // (2 * bytes_per_row)  # double-buffered
        block_n = int(max(row_align, rows))

    if block_n >= n:
        block_n = n                                   # single tile, full batch
    else:
        block_n = max(row_align, (block_n // row_align) * row_align)

    num_tiles = -(-n // block_n)

    # Scoped-VMEM limit: what we actually use plus headroom, never above the
    # physical capacity (important on v7x's 64 MiB).
    bn_pad = ((block_n + row_align - 1) // row_align) * row_align
    used = 2 * bn_pad * bytes_per_row + 2 * 8 * 128 * 4
    vmem_limit_bytes = int(min(vmem_cap,
                               max(used + 4 * 1024 * 1024, 32 * 1024 * 1024)))

    kernel = functools.partial(
        _focal_loss_kernel,
        gamma=float(gamma),
        use_focal=bool(use_focal),
        n_total=n,
        block_n=block_n,
        upcast_to_f32=bool(upcast),
    )

    partial_sums = pl.pallas_call(
        kernel,
        out_shape=jax.ShapeDtypeStruct((num_tiles, 8, 128), jnp.float32),
        grid=(num_tiles,),
        in_specs=[
            pl.BlockSpec((block_n, c), lambda i: (i, 0)),
            pl.BlockSpec((block_n, 1), lambda i: (i, 0)),
        ],
        out_specs=pl.BlockSpec((1, 8, 128), lambda i: (i, 0, 0)),
        compiler_params=pltpu.CompilerParams(
            dimension_semantics=("parallel",),   # tiles shard across TCs (v7x)
            vmem_limit_bytes=vmem_limit_bytes,
        ),
    )(logits, t2d)

    # Each tile broadcast its partial sum over an (8, 128) block; pick one
    # element per tile and finish the mean outside the kernel.
    return -jnp.sum(partial_sums[:, 0, 0]) / jnp.float32(n)


def _reference(logits, target, gamma=2.0, use_focal=True):
    x = logits.astype(jnp.float32)
    logpt = jax.nn.log_softmax(x, axis=1)
    if use_focal:
        pt = jnp.exp(logpt)
        logpt = (1.0 - pt) ** gamma * logpt
    picked = jnp.take_along_axis(logpt, target.astype(jnp.int32)[:, None], axis=1)
    return -jnp.mean(picked)


if __name__ == "__main__":
    key = jax.random.PRNGKey(0)
    k1, k2, k3, k4 = jax.random.split(key, 4)

    # Case 1: small f32 problem, single tile (matches the module's [N, C] spec).
    N1, C1 = 8, 32
    logits1 = jax.random.normal(k1, (N1, C1), dtype=jnp.float32)
    target1 = jax.random.randint(k2, (N1,), 0, C1, dtype=jnp.int32)
    loss1 = jax.block_until_ready(focal_loss(logits1, target1, gamma=2.0))
    ref1 = _reference(logits1, target1, gamma=2.0)
    assert jnp.allclose(loss1, ref1, rtol=1e-5, atol=1e-5), (loss1, ref1)

    # Case 2: bf16 logits, multi-tile grid with a partial last tile (exercises
    # the parallel grid / partial-sum output / masking / bf16-compute path).
    # Looser tolerance: on v6e/v7x the exp path runs in bf16 (f32 reference).
    N2, C2 = 40, 128
    logits2 = jax.random.normal(k3, (N2, C2), dtype=jnp.float32).astype(jnp.bfloat16)
    target2 = jax.random.randint(k4, (N2,), 0, C2, dtype=jnp.int32)
    loss2 = jax.block_until_ready(
        focal_loss(logits2, target2, gamma=2.0, block_n=16)
    )
    ref2 = _reference(logits2, target2, gamma=2.0)
    assert jnp.allclose(loss2, ref2, rtol=1e-2, atol=1e-2), (loss2, ref2)

    # Case 3: focal modulation disabled (plain NLL of log_softmax).
    loss3 = jax.block_until_ready(focal_loss(logits1, target1, use_focal=False))
    ref3 = _reference(logits1, target1, use_focal=False)
    assert jnp.allclose(loss3, ref3, rtol=1e-5, atol=1e-5), (loss3, ref3)

    print("KERNEL_OK")
</pallas_src>

<mosaic_0001>
module attributes {stable_mosaic.version = 11 : i64} {
  func.func @_focal_loss_kernel(%arg0: i32, %arg1: memref<8x32xf32, #tpu.memory_space<vmem>>, %arg2: memref<8x1xi32, #tpu.memory_space<vmem>>, %arg3: memref<1x8x128xf32, #tpu.memory_space<vmem>>) attributes {dimension_semantics = [#tpu.dimension_semantics<parallel>], iteration_bounds = array<i64: 1>, scalar_prefetch = 0 : i64, scratch_operands = 0 : i64, tpu.core_type = #tpu.core_type<tc>, window_params = [{transform_indices = @transform_0, window_bounds = array<i64: 8, 32>}, {transform_indices = @transform_1, window_bounds = array<i64: 8, 1>}, {transform_indices = @transform_2, window_bounds = array<i64: 1, 8, 128>}]} {
    %c0 = arith.constant 0 : index
    %c0_0 = arith.constant 0 : index
    %0 = vector.load %arg1[%c0, %c0_0] : memref<8x32xf32, #tpu.memory_space<vmem>>, vector<8x32xf32>
    %c0_1 = arith.constant 0 : index
    %c0_2 = arith.constant 0 : index
    %1 = vector.load %arg2[%c0_1, %c0_2] : memref<8x1xi32, #tpu.memory_space<vmem>>, vector<8x1xi32>
    %cst = arith.constant dense<0xFF800000> : vector<8xf32>
    %2 = vector.multi_reduction <maximumf>, %0, %cst [1] : vector<8x32xf32> to vector<8xf32>
    %3 = vector.shape_cast %2 : vector<8xf32> to vector<8x1xf32>
    %4 = vector.broadcast %3 : vector<8x1xf32> to vector<8x32xf32>
    %5 = arith.subf %0, %4 : vector<8x32xf32>
    %6 = math.exp %5 : vector<8x32xf32>
    %cst_3 = arith.constant dense<0.000000e+00> : vector<8xf32>
    %7 = vector.multi_reduction <add>, %6, %cst_3 [1] : vector<8x32xf32> to vector<8xf32>
    %8 = vector.shape_cast %7 : vector<8xf32> to vector<8x1xf32>
    %9 = math.log %8 : vector<8x1xf32>
    %10 = tpu.iota {dimensions = array<i32: 1>} : vector<8x32xi32>
    %11 = vector.broadcast %1 : vector<8x1xi32> to vector<8x32xi32>
    %12 = arith.cmpi eq, %10, %11 : vector<8x32xi32>
    %c0_i32 = arith.constant 0 : i32
    %13 = arith.sitofp %c0_i32 : i32 to f32
    %14 = vector.broadcast %13 : f32 to vector<8x32xf32>
    %15 = arith.select %12, %0, %14 : vector<8x32xi1>, vector<8x32xf32>
    %cst_4 = arith.constant dense<0.000000e+00> : vector<8xf32>
    %16 = vector.multi_reduction <add>, %15, %cst_4 [1] : vector<8x32xf32> to vector<8xf32>
    %17 = vector.shape_cast %16 : vector<8xf32> to vector<8x1xf32>
    %18 = arith.subf %17, %3 : vector<8x1xf32>
    %19 = arith.subf %18, %9 : vector<8x1xf32>
    %20 = math.exp %19 : vector<8x1xf32>
    %cst_5 = arith.constant 1.000000e+00 : f32
    %21 = vector.broadcast %cst_5 : f32 to vector<8x1xf32>
    %22 = arith.subf %21, %20 : vector<8x1xf32>
    %23 = arith.mulf %22, %22 : vector<8x1xf32>
    %24 = arith.mulf %23, %19 : vector<8x1xf32>
    %25 = tpu.iota {dimensions = array<i32: 0>} : vector<8x1xi32>
    %c8_i32 = arith.constant 8 : i32
    %26 = arith.muli %arg0, %c8_i32 : i32
    %27 = vector.broadcast %26 : i32 to vector<8x1xi32>
    %28 = arith.addi %25, %27 : vector<8x1xi32>
    %c8_i32_6 = arith.constant 8 : i32
    %29 = vector.broadcast %c8_i32_6 : i32 to vector<8x1xi32>
    %30 = arith.cmpi slt, %28, %29 : vector<8x1xi32>
    %cst_7 = arith.constant 0.000000e+00 : f32
    %31 = vector.broadcast %cst_7 : f32 to vector<8x1xf32>
    %32 = arith.select %30, %24, %31 : vector<8x1xi1>, vector<8x1xf32>
    %33 = vector.shape_cast %32 : vector<8x1xf32> to vector<1x8x1xf32>
    %cst_8 = arith.constant dense<0.000000e+00> : vector<1xf32>
    %34 = vector.multi_reduction <add>, %33, %cst_8 [1, 2] : vector<1x8x1xf32> to vector<1xf32>
    %35 = vector.shape_cast %34 : vector<1xf32> to vector<1x1x1xf32>
    %36 = vector.extract %35[0, 0, 0] : f32 from vector<1x1x1xf32>
    %37 = vector.broadcast %36 : f32 to vector<1x8x128xf32>
    %c0_9 = arith.constant 0 : index
    %c0_10 = arith.constant 0 : index
    %c0_11 = arith.constant 0 : index
    %38 = vector.load %arg3[%c0_9, %c0_10, %c0_11] : memref<1x8x128xf32, #tpu.memory_space<vmem>>, vector<1x8x128xf32>
    tpu.vector_store %arg3[%c0_9, %c0_10, %c0_11], %37 {strides = array<i32>} : memref<1x8x128xf32, #tpu.memory_space<vmem>>, vector<1x8x128xf32>,
    return
  }
  func.func @transform_0(%arg0: i32) -> (i32, i32) {
    %c0_i32 = arith.constant 0 : i32
    %c0_i32_0 = arith.constant 0 : i32
    return %arg0, %c0_i32 : i32, i32
  }
  func.func @transform_1(%arg0: i32) -> (i32, i32) {
    %c0_i32 = arith.constant 0 : i32
    %c0_i32_0 = arith.constant 0 : i32
    return %arg0, %c0_i32 : i32, i32
  }
  func.func @transform_2(%arg0: i32) -> (i32, i32, i32) {
    %c0_i32 = arith.constant 0 : i32
    %c0_i32_0 = arith.constant 0 : i32
    %c0_i32_1 = arith.constant 0 : i32
    return %arg0, %c0_i32, %c0_i32_0 : i32, i32, i32
  }
}

</mosaic_0001>

<bundles_post_ra>
// kernel: tpu_custom_call.1
= control target key start
LH: loop header
LB: loop body
LE: loop exit
PB: predicated region body
PF: predicated region fallthrough
CT: control target
= control target key end

     0   :  { %vm14_vm0 = vcmask 261120   ;;  %s150_s0 = inlined_call_operand.vmem [shape: f32[8,32], index: 0, kind: input, shape index: {}]   ;;  %s151_s1 = inlined_call_operand.vmem [shape: s32[8,1], index: 1, kind: input, shape index: {}]   ;;  %s152_s2 = inlined_call_operand.hbm [shape: f32[1,8,128], index: 2, kind: output, shape index: {}]  }
   0x1   :  { %v12_v0 = vld [vmem:[%s150_s0] sm:$0xff] }
   0x2   :  { %7 = vsyncpa [#allocation3], 0  ;;  %v15_v1 = vsel %vm14_vm0, %v12_v0, -inf  ;;  %v112_v2 = vmov 0   ;;  %v13_v3 = vld [vmem:[%s151_s1] sm:$0xff]  ;;  %v26_v7 = vlaneseq  ;;  %vm50_vm2 = vcmask 7168  }
   0x3   :  { %81 = vset.pattern.permute.xlu0 %v112_v2  ;;  %s113_s0 = smov [#allocation2]  }
   0x4   :  { %16 = vmax.xlane.f32.xlu0 %v15_v1  ;;  %v27_v8 = vand.u32 127, %v26_v7  ;;  %s69_s1 = sshll.u32 %s113_s0, 4  ;;  %s70_s1 = int_to_ptr.vmem [resolvable:$true] %s69_s1 }
   0x5   :  { %s88_s14 = scalar_lea.vmem %s70_s1, 128  ;;  %p93_p1 = scmp.lt.s32.totalorder %s70_s1, %s70_s1 }
   0x6   :  { %p89_p0 = scmp.ne.s32.totalorder %s70_s1, %s88_s14  ;;  %p94_p2 = scmp.lt.s32.totalorder %s88_s14, %s88_s14 }
   0x8   :  { %p95_p3 = por %p94_p2, %p93_p1 }
   0xa   :  { %p96_p4 = pnand %p95_p3, %p89_p0 }
  0x1a   :  { %29 = vperm.xlu0 %81, %v13_v3  }
  0x91   :  { %v17_v4 = vpop.xlane.xlu0 %16 }
  0x92   :  { %v18_v5 = vsub.f32 %v12_v0, %v17_v4 }
  0x94   :  { %v19_v6 = vmul.f32 1.442695, %v18_v5 }
  0x96   :  { %82 = vpow2.f32 %v19_v6 }
  0x99   :  { %v30_v9 = vpop.permute.xlu0 %29 }
  0x9a   :  { %vm31_vm1 = vcmp.eq.s32.totalorder %v27_v8, %v30_v9 }
  0x9b   :  { %v32_v11 = vsel %vm31_vm1, %v12_v0, 0.0 }
  0x9c   :  { %v33_v13 = vsel %vm14_vm0, %v32_v11, 0.0 }
  0xa0   :  { %v83_v10 = vpop.eup %82 }
  0xa1   :  { %v21_v12 = vsel %vm14_vm0, %v83_v10, 0.0 }
  0xa2   :  { %22 = vadd.xlane.f32.xlu1 %v21_v12 }
  0xa6   :  { %34 = vadd.xlane.f32.xlu1 %v33_v13 }
 0x12f   :  { %v23_v14 = vpop.xlane.xlu1 %22 }
 0x130   :  { %84 = vlog2.f32 %v23_v14 }
 0x133   :  { %v35_v15 = vpop.xlane.xlu1 %34 }
 0x134   :  { %v36_v18 = vsub.f32 %v35_v15, %v17_v4 }
 0x13a   :  { %v85_v16 = vpop.eup %84 }
 0x13b   :  { %v25_v17 = vmul.f32 0.6931472, %v85_v16 }
 0x13d   :  { %v37_v19 = vsub.f32 %v36_v18, %v25_v17 }
 0x13f   :  { %v38_v20 = vmul.f32 1.442695, %v37_v19 }
 0x141   :  { %86 = vpow2.f32 %v38_v20 }
 0x14b   :  { %v87_v21 = vpop.eup %86 }
 0x14c   :  { %v40_v22 = vsub.f32 1.0, %v87_v21 }
 0x14e   :  { %v41_v23 = vmul.f32 %v40_v22, %v40_v22 }
 0x150   :  { %v42_v24 = vmul.f32 %v41_v23, %v37_v19 }
 0x152   :  { %v51_v25 = vsel %vm50_vm2, %v42_v24, 0.0 }
 0x153   :  { %52 = vadd.xlane.f32.xlu1 %v51_v25 }
 0x1e0   :  { %v53_v26 = vpop.xlane.xlu1 %52 }
 0x1e1   :  { %v54_v27 = vrot.slane %v53_v26, 4 }
 0x1e3   :  { %v55_v28 = vadd.f32 %v54_v27, %v53_v26 }
 0x1e5   :  { %v56_v29 = vrot.slane %v55_v28, 2 }
 0x1e7   :  { %v57_v30 = vadd.f32 %v56_v29, %v55_v28 }
 0x1e9   :  { %v58_v31 = vrot.slane %v57_v30, 1 }
 0x1eb   :  { %v59_v32 = vadd.f32 %v58_v31, %v57_v30 }
 0x1ed   :  { %77 = vpush %v59_v32 }
 0x21e   :  { %s78_s13 = spop %77 }
 0x21f   :  { %v61_v33 = vstv %s78_s13 }
 0x220   :  { %62 = vst [vmem:[#allocation2] sm:$0xff] %v61_v33 }
 0x221   :  { %99 = shalt.err (!%p96_p4)
}
 0x222   :  { %s100_s17 = scalar_lea.hbm %s152_s2, 128 }
 0x223   :  { %p101_p5 = scmp.ne.s32.totalorder %s152_s2, %s100_s17  ;;  %p104_p6 = scmp.lt.u32.totalorder %s100_s17, %s152_s2 }
 0x225   :  { %p106_p7 = pnand %p104_p6, %p101_p5 }
 0x227   :  { %109 = shalt.err (!%p106_p7)
}
 0x228   :  { %72 = dma.vmem_to_hbm [thread:$0]  %s70_s1, 128, %s152_s2, [#allocation3]  }
 0x229   :  { %110 = dma.done.wait [#allocation3], 128  }
 0x22a   :  { %111 = vsyncadd [#allocation3], 4294967168 }
 0x22b   :  { %76 = vsyncpa [#allocation3], 1 }

</bundles_post_ra>
